<compile_context>
chip_gen: v5e
topology: v5e:2x2
jax: 0.10.0
libtpu: 0.0.40
codegen_flags: <defaults>
</compile_context>

<pallas_src>
import functools

import jax
import jax.numpy as jnp
from jax.experimental import pallas as pl
from jax.experimental.pallas import tpu as pltpu


def _sentinel_fused_kernel(n_valid, pooled_ref, wenc_ref, wsel_ref, out_ref):
    """Fused dense -> selected-label logits -> masked softmax.

    grid = (Bp // tb,): one "parallel" axis over batch tiles.  Both weight
    operands have constant index maps, so they are DMA'd once and stay
    resident in VMEM across batch tiles.
    """
    # h0 = tanh(pooled @ w_enc): [tb, D] bf16 x [D, D] bf16 -> f32 accumulate.
    h0 = jnp.tanh(jnp.dot(pooled_ref[...], wenc_ref[...],
                          preferred_element_type=jnp.float32))

    # Logits over the pre-gathered label columns: [tb, D] x [D, Kp] -> [tb, Kp].
    logits = jnp.dot(h0.astype(jnp.bfloat16), wsel_ref[...],
                     preferred_element_type=jnp.float32)

    # Masked softmax over the K real label columns (pad columns -> -inf -> 0).
    col = jax.lax.broadcasted_iota(jnp.int32, logits.shape, 1)
    masked = jnp.where(col < n_valid, logits, -jnp.inf)
    m = jnp.max(masked, axis=-1, keepdims=True)
    e = jnp.exp(masked - m)
    denom = jnp.sum(e, axis=-1, keepdims=True)
    out_ref[...] = (e * pl.reciprocal(denom)).astype(out_ref.dtype)


def prepare_sentinel_weights(params, token_ids):
    """One-time (per model) preparation of the constant head weights.

    Hoisted out of the per-call hot path: gathers the K selected LM-head
    columns, pads them to the 128-lane width, and casts both weights to bf16
    (native MXU input dtype); the kernel only ever streams these K columns,
    never the full vocab-sized W_lm.
    """
    D = params["w_enc"].shape[0]
    K = int(token_ids.shape[0])
    Kp = max(128, ((K + 127) // 128) * 128)   # pad label count to lane width

    w_sel = jnp.zeros((D, Kp), jnp.bfloat16)
    w_sel = w_sel.at[:, :K].set(params["w_lm"][:, token_ids].astype(jnp.bfloat16))
    w_enc = params["w_enc"].astype(jnp.bfloat16)
    return w_enc, w_sel, K


def sentinel_head_fused(pooled, w_enc_bf16, w_sel, n_valid, *, tb=None):
    """probabilities = softmax((tanh(pooled @ w_enc) @ W_lm)[:, token_ids], -1),

    with the label-column gather already folded into w_sel.
    """
    B, D = pooled.shape
    Dw, Kp = w_sel.shape
    assert Dw == D, (Dw, D)

    Bp = max(16, ((B + 15) // 16) * 16)       # bf16 sublane pack
    if tb is None:
        tb = min(256, Bp)                     # fill MXU M dim when batch is large
    Bp = ((Bp + tb - 1) // tb) * tb           # batch padded to a multiple of tb

    pooled_p = jnp.pad(pooled.astype(jnp.bfloat16), ((0, Bp - B), (0, 0)))

    kern = functools.partial(_sentinel_fused_kernel, n_valid)
    probs = pl.pallas_call(
        kern,
        out_shape=jax.ShapeDtypeStruct((Bp, Kp), jnp.float32),
        grid=(Bp // tb,),
        in_specs=[
            pl.BlockSpec((tb, D), lambda b: (b, 0)),    # pooled: streams per tile
            pl.BlockSpec((D, D), lambda b: (0, 0)),     # w_enc: VMEM-resident
            pl.BlockSpec((D, Kp), lambda b: (0, 0)),    # selected lm_head cols: resident
        ],
        out_specs=pl.BlockSpec((tb, Kp), lambda b: (b, 0)),
        compiler_params=pltpu.CompilerParams(
            dimension_semantics=("parallel",)),
    )(pooled_p, w_enc_bf16, w_sel)
    return probs[:B, :n_valid]


def synthetic_backbone_pooled(corpus_ids, corpus_mask, params):
    """Deterministic stand-in for the T5 backbone up to the final dense.

    # TODO(synk): the pretrained T5 encoder/decoder stack (and .generate())
    # has no clean single-kernel Pallas equivalent; this embed + masked
    # mean-pool stand-in produces the features feeding the fused Pallas head.
    """
    emb = params["embedding"][corpus_ids]                       # [B, S, D]
    mask = corpus_mask[..., None].astype(emb.dtype)             # [B, S, 1]
    pooled = (emb * mask).sum(axis=1) / jnp.maximum(mask.sum(axis=1), 1.0)
    return pooled                                               # [B, D]


def sentinel_forward(corpus_ids, corpus_mask, params, head_weights):
    w_enc_bf16, w_sel, n_valid = head_weights
    pooled = synthetic_backbone_pooled(corpus_ids, corpus_mask, params)
    probabilities = sentinel_head_fused(pooled, w_enc_bf16, w_sel, n_valid)
    return probabilities


if __name__ == "__main__":
    # Small, deterministic shapes.
    B, S = 2, 8            # batch, sequence length
    D = 256                # hidden size (full-D single contraction step in kernel)
    V = 512                # synthetic vocab size for the lm_head
    VOCAB_IN = 128         # input-id vocab for the synthetic embedding
    # token ids of the 9 dataset labels (Human, Gemini, GPT, Deepseek, Llama, ... + Human)
    token_ids = jnp.array([3, 17, 42, 64, 99, 123, 200, 311, 407], dtype=jnp.int32)

    key = jax.random.PRNGKey(0)
    k_emb, k_enc, k_lm, k_ids, k_mask = jax.random.split(key, 5)

    params = {
        "embedding": jax.random.normal(k_emb, (VOCAB_IN, D), jnp.float32) * 0.02,
        "w_enc": jax.random.normal(k_enc, (D, D), jnp.float32) * 0.02,
        "w_lm": jax.random.normal(k_lm, (D, V), jnp.float32) * 0.02,
    }

    corpus_ids = jax.random.randint(k_ids, (B, S), 0, VOCAB_IN, dtype=jnp.int32)
    corpus_mask = (jax.random.uniform(k_mask, (B, S)) > 0.2).astype(jnp.int32)
    corpus_mask = corpus_mask.at[:, 0].set(1)   # at least one valid token per row

    # One-time constant-weight prep (hoisted out of the hot path).
    head_weights = prepare_sentinel_weights(params, token_ids)
    w_enc_bf16, w_sel, K = head_weights

    probs = sentinel_forward(corpus_ids, corpus_mask, params, head_weights)
    probs = jax.block_until_ready(probs)
    assert probs.shape == (B, K)

    # Reference check (pure JAX, same bf16 matmul precision path as the kernel).
    pooled_ref = synthetic_backbone_pooled(corpus_ids, corpus_mask, params)
    h0_ref = jnp.tanh(jnp.dot(pooled_ref.astype(jnp.bfloat16), w_enc_bf16,
                              preferred_element_type=jnp.float32))
    logits_ref = jnp.dot(h0_ref.astype(jnp.bfloat16), w_sel[:, :K],
                         preferred_element_type=jnp.float32)
    ref = jax.nn.softmax(logits_ref, axis=-1)
    assert jnp.allclose(probs, ref, atol=2e-3, rtol=2e-3), (
        jnp.max(jnp.abs(probs - ref)))
    assert jnp.allclose(probs.sum(axis=-1), 1.0, atol=1e-5)

    # Sanity check against the full-precision f32 reference (coarser tolerance,
    # accounts for the bf16 matmul inputs).
    h0_f32 = jnp.tanh(pooled_ref @ params["w_enc"])
    ref_f32 = jax.nn.softmax((h0_f32 @ params["w_lm"])[:, token_ids], axis=-1)
    assert jnp.allclose(probs, ref_f32, atol=2e-2), (
        jnp.max(jnp.abs(probs - ref_f32)))

    print("KERNEL_OK")
</pallas_src>

<mosaic_0001>
module attributes {stable_mosaic.version = 11 : i64} {
  func.func @_sentinel_fused_kernel(%arg0: i32, %arg1: memref<16x256xbf16, #tpu.memory_space<vmem>>, %arg2: memref<256x256xbf16, #tpu.memory_space<vmem>>, %arg3: memref<256x128xbf16, #tpu.memory_space<vmem>>, %arg4: memref<16x128xf32, #tpu.memory_space<vmem>>) attributes {dimension_semantics = [#tpu.dimension_semantics<parallel>], iteration_bounds = array<i64: 1>, scalar_prefetch = 0 : i64, scratch_operands = 0 : i64, tpu.core_type = #tpu.core_type<tc>, window_params = [{transform_indices = @transform_0, window_bounds = array<i64: 16, 256>}, {pipeline_mode = #tpu.pipeline_mode<synchronous>, transform_indices = @transform_1, window_bounds = array<i64: 256, 256>}, {pipeline_mode = #tpu.pipeline_mode<synchronous>, transform_indices = @transform_2, window_bounds = array<i64: 256, 128>}, {transform_indices = @transform_3, window_bounds = array<i64: 16, 128>}]} {
    %c0 = arith.constant 0 : index
    %c0_0 = arith.constant 0 : index
    %0 = vector.load %arg1[%c0, %c0_0] : memref<16x256xbf16, #tpu.memory_space<vmem>>, vector<16x256xbf16>
    %c0_1 = arith.constant 0 : index
    %c0_2 = arith.constant 0 : index
    %1 = vector.load %arg2[%c0_1, %c0_2] : memref<256x256xbf16, #tpu.memory_space<vmem>>, vector<256x256xbf16>
    %cst = arith.constant dense<0.000000e+00> : vector<16x256xf32>
    %2 = tpu.matmul %0, %1, %cst {dimension_numbers = #tpu.dot_dimension_numbers<[1], [0], [0], [1], [0, 0, 1, 1], [], []>} : vector<16x256xbf16>, vector<256x256xbf16>, vector<16x256xf32> -> vector<16x256xf32>
    %3 = math.tanh %2 : vector<16x256xf32>
    %4 = arith.truncf %3 : vector<16x256xf32> to vector<16x256xbf16>
    %c0_3 = arith.constant 0 : index
    %c0_4 = arith.constant 0 : index
    %5 = vector.load %arg3[%c0_3, %c0_4] : memref<256x128xbf16, #tpu.memory_space<vmem>>, vector<256x128xbf16>
    %cst_5 = arith.constant dense<0.000000e+00> : vector<16x128xf32>
    %6 = tpu.matmul %4, %5, %cst_5 {dimension_numbers = #tpu.dot_dimension_numbers<[1], [0], [0], [1], [0, 0, 1, 1], [], []>} : vector<16x256xbf16>, vector<256x128xbf16>, vector<16x128xf32> -> vector<16x128xf32>
    %7 = tpu.iota {dimensions = array<i32: 1>} : vector<16x128xi32>
    %c9_i32 = arith.constant 9 : i32
    %8 = vector.broadcast %c9_i32 : i32 to vector<16x128xi32>
    %9 = arith.cmpi slt, %7, %8 : vector<16x128xi32>
    %cst_6 = arith.constant 0xFF800000 : f32
    %10 = vector.broadcast %cst_6 : f32 to vector<16x128xf32>
    %11 = arith.select %9, %6, %10 : vector<16x128xi1>, vector<16x128xf32>
    %cst_7 = arith.constant dense<0xFF800000> : vector<16xf32>
    %12 = vector.multi_reduction <maximumf>, %11, %cst_7 [1] : vector<16x128xf32> to vector<16xf32>
    %13 = vector.shape_cast %12 : vector<16xf32> to vector<16x1xf32>
    %14 = vector.broadcast %13 : vector<16x1xf32> to vector<16x128xf32>
    %15 = arith.subf %11, %14 : vector<16x128xf32>
    %16 = math.exp %15 : vector<16x128xf32>
    %cst_8 = arith.constant dense<0.000000e+00> : vector<16xf32>
    %17 = vector.multi_reduction <add>, %16, %cst_8 [1] : vector<16x128xf32> to vector<16xf32>
    %18 = vector.shape_cast %17 : vector<16xf32> to vector<16x1xf32>
    %19 = tpu.reciprocal %18 : vector<16x1xf32> -> vector<16x1xf32>
    %20 = vector.broadcast %19 : vector<16x1xf32> to vector<16x128xf32>
    %21 = arith.mulf %16, %20 : vector<16x128xf32>
    %c0_9 = arith.constant 0 : index
    %c0_10 = arith.constant 0 : index
    %22 = vector.load %arg4[%c0_9, %c0_10] : memref<16x128xf32, #tpu.memory_space<vmem>>, vector<16x128xf32>
    tpu.vector_store %arg4[%c0_9, %c0_10], %21 {strides = array<i32>} : memref<16x128xf32, #tpu.memory_space<vmem>>, vector<16x128xf32>,
    return
  }
  func.func @transform_0(%arg0: i32) -> (i32, i32) {
    %c0_i32 = arith.constant 0 : i32
    %c0_i32_0 = arith.constant 0 : i32
    return %arg0, %c0_i32 : i32, i32
  }
  func.func @transform_1(%arg0: i32) -> (i32, i32) {
    %c0_i32 = arith.constant 0 : i32
    %c0_i32_0 = arith.constant 0 : i32
    %c0_i32_1 = arith.constant 0 : i32
    return %c0_i32, %c0_i32_0 : i32, i32
  }
  func.func @transform_2(%arg0: i32) -> (i32, i32) {
    %c0_i32 = arith.constant 0 : i32
    %c0_i32_0 = arith.constant 0 : i32
    %c0_i32_1 = arith.constant 0 : i32
    return %c0_i32, %c0_i32_0 : i32, i32
  }
  func.func @transform_3(%arg0: i32) -> (i32, i32) {
    %c0_i32 = arith.constant 0 : i32
    %c0_i32_0 = arith.constant 0 : i32
    return %arg0, %c0_i32 : i32, i32
  }
}

</mosaic_0001>

<bundles_post_ra>
// kernel: tpu_custom_call.1
= control target key start
LH: loop header
LB: loop body
LE: loop exit
PB: predicated region body
PF: predicated region fallthrough
CT: control target
= control target key end

     0   :  { %8 = vsyncpa [#allocation3], 0  ;;  %s980_s0 = inlined_call_operand.hbm [shape: bf16[16,256], index: 0, kind: input, shape index: {}]   ;;  %s981_s1 = inlined_call_operand.hbm [shape: bf16[256,256], index: 1, kind: input, shape index: {}]   ;;  %s982_s2 = inlined_call_operand.hbm [shape: bf16[256,128], index: 2, kind: input, shape index: {}]   ;;  %s983_s3 = inlined_call_operand.hbm [shape: f32[16,128], index: 3, kind: output, shape index: {}]  }
   0x1   :  { %9 = vsyncpa [#allocation6], 0 }
   0x2   :  { %10 = vsyncpa [#allocation4], 0  ;;  %s28_s14 = sshll.u32 %s981_s1, 4  ;;  %s931_s15 = smov [#allocation5]   ;;  %s29_s14 = int_to_ptr.hbm [resolvable:$true] %s28_s14 }
   0x3   :  { %s30_s16 = sshll.u32 %s931_s15, 4  ;;  %s15_s19 = sshll.u32 %s980_s0, 4  ;;  %s31_s16 = int_to_ptr.vmem [resolvable:$true] %s30_s16  ;;  %s16_s19 = int_to_ptr.hbm [resolvable:$true] %s15_s19 }
   0x4   :  { %s932_s20 = smov 128   ;;  %s933_s21 = smov 8  }
   0x5   :  { %36 = dma.hbm_to_vmem [thread:$0]  %s29_s14, 4096, %s31_s16, [#allocation6], %s932_s20, %s932_s20, %s933_s21  }
   0x6   :  { %s934_s22 = smov [#allocation2]   ;;  %s41_s1 = sshll.u32 %s982_s2, 4  ;;  %s42_s1 = int_to_ptr.hbm [resolvable:$true] %s41_s1 }
   0x7   :  { %s17_s23 = sshll.u32 %s934_s22, 4  ;;  %s935_s0 = smov [#allocation7]   ;;  %s18_s23 = int_to_ptr.vmem [resolvable:$true] %s17_s23 }
   0x8   :  { %23 = dma.hbm_to_vmem [thread:$0]  %s16_s19, 256, %s18_s23, [#allocation3], %s932_s20, %s932_s20, %s933_s21  }
   0x9   :  { %s43_s26 = sshll.u32 %s935_s0, 4  ;;  %s936_s27 = smov 64   ;;  %s44_s26 = int_to_ptr.vmem [resolvable:$true] %s43_s26 }
   0xa   :  { %s937_s28 = smov 4  }
   0xb   :  { %49 = dma.hbm_to_vmem [thread:$0]  %s42_s1, 2048, %s44_s26, [#allocation6], %s936_s27, %s936_s27, %s937_s28  }
   0xc   :  { %925 = dma.done.wait [#allocation3], 256  }
   0xd   :  { %926 = vsyncadd [#allocation3], 4294967040 }
   0xe   :  { %927 = dma.done.wait [#allocation6], 6144  }
   0xf   :  { %928 = vsyncadd [#allocation6], 4294961152  ;;  %v621_v0 = vld [vmem:[#allocation5 + $0x70] sm:$0xf]  ;;  %v772_v1 = vld [vmem:[#allocation5 + $0x74] sm:$0xf0] }
  0x10   :  { %v685_v2 = vld [vmem:[#allocation5 + $0xf0] sm:$0xf]  ;;  %v622_v3 = vor.u32 %v772_v1, %v621_v0  ;;  %v788_v4 = vld [vmem:[#allocation5 + $0xf4] sm:$0xf0]  ;;  %v771_v5 = vld [vmem:[#allocation5 + $0x74] sm:$0xf] }
  0x11   :  { %v623_v6 = vld [vmem:[#allocation5 + $0x78] sm:$0xf0]  ;;  %v686_v7 = vor.u32 %v788_v4, %v685_v2  ;;  %v787_v9 = vld [vmem:[#allocation5 + $0xf4] sm:$0xf]  ;;  %v613_v11 = vld [vmem:[#allocation5 + $0x60] sm:$0xf] }
  0x12   :  { %v626_v8 = vor.u32 %v771_v5, %v623_v6  ;;  %v687_v10 = vld [vmem:[#allocation5 + $0xf8] sm:$0xf0]  ;;  %266 = vmatpush.bf16.msra.mxu0 %v622_v3  ;;  %v770_v13 = vld [vmem:[#allocation5 + $0x64] sm:$0xf0]  ;;  %v677_v14 = vld [vmem:[#allocation5 + $0xe0] sm:$0xf] }
  0x13   :  { %v690_v12 = vor.u32 %v787_v9, %v687_v10  ;;  %v786_v15 = vld [vmem:[#allocation5 + $0xe4] sm:$0xf0]  ;;  %280 = vmatpush.bf16.msra.mxu1 %v686_v7  ;;  %v614_v16 = vor.u32 %v770_v13, %v613_v11  ;;  %v769_v18 = vld [vmem:[#allocation5 + $0x64] sm:$0xf]  ;;  %v615_v19 = vld [vmem:[#allocation5 + $0x68] sm:$0xf0] }
  0x14   :  { %294 = vmatpush.bf16.msra.mxu2 %v626_v8  ;;  %v678_v17 = vor.u32 %v786_v15, %v677_v14  ;;  %v785_v20 = vld [vmem:[#allocation5 + $0xe4] sm:$0xf]  ;;  %v618_v21 = vor.u32 %v769_v18, %v615_v19  ;;  %v679_v22 = vld [vmem:[#allocation5 + $0xe8] sm:$0xf0]  ;;  %v605_v23 = vld [vmem:[#allocation5 + $0x50] sm:$0xf] }
  0x15   :  { %308 = vmatpush.bf16.msra.mxu3 %v690_v12  ;;  %v768_v24 = vld [vmem:[#allocation5 + $0x54] sm:$0xf0]  ;;  %v682_v25 = vor.u32 %v785_v20, %v679_v22  ;;  %v669_v26 = vld [vmem:[#allocation5 + $0xd0] sm:$0xf]  ;;  %v767_v28 = vld [vmem:[#allocation5 + $0x54] sm:$0xf] }
  0x16   :  { %v784_v27 = vld [vmem:[#allocation5 + $0xd4] sm:$0xf0]  ;;  %267 = vmatpush.bf16.msra.mxu0 %v614_v16  ;;  %v606_v29 = vor.u32 %v768_v24, %v605_v23  ;;  %v607_v30 = vld [vmem:[#allocation5 + $0x58] sm:$0xf0]  ;;  %v783_v31 = vld [vmem:[#allocation5 + $0xd4] sm:$0xf] }
  0x17   :  { %v671_v32 = vld [vmem:[#allocation5 + $0xd8] sm:$0xf0]  ;;  %281 = vmatpush.bf16.msra.mxu1 %v678_v17  ;;  %v670_v33 = vor.u32 %v784_v27, %v669_v26  ;;  %v610_v34 = vor.u32 %v767_v28, %v607_v30  ;;  %v597_v35 = vld [vmem:[#allocation5 + $0x40] sm:$0xf]  ;;  %v766_v36 = vld [vmem:[#allocation5 + $0x44] sm:$0xf0] }
  0x18   :  { %295 = vmatpush.bf16.msra.mxu2 %v618_v21  ;;  %v661_v37 = vld [vmem:[#allocation5 + $0xc0] sm:$0xf]  ;;  %v674_v38 = vor.u32 %v783_v31, %v671_v32  ;;  %v782_v39 = vld [vmem:[#allocation5 + $0xc4] sm:$0xf0]  ;;  %v765_v40 = vld [vmem:[#allocation5 + $0x44] sm:$0xf]  ;;  %v598_v44 = vor.u32 %v766_v36, %v597_v35 }
  0x19   :  { %309 = vmatpush.bf16.msra.mxu3 %v682_v25  ;;  %v599_v41 = vld [vmem:[#allocation5 + $0x48] sm:$0xf0]  ;;  %v781_v42 = vld [vmem:[#allocation5 + $0xc4] sm:$0xf]  ;;  %v662_v45 = vor.u32 %v782_v39, %v661_v37  ;;  %v589_v47 = vld [vmem:[#allocation5 + $0x30] sm:$0xf] }
  0x1a   :  { %v663_v43 = vld [vmem:[#allocation5 + $0xc8] sm:$0xf0]  ;;  %268 = vmatpush.bf16.msra.mxu0 %v606_v29  ;;  %v602_v46 = vor.u32 %v765_v40, %v599_v41  ;;  %v764_v48 = vld [vmem:[#allocation5 + $0x34] sm:$0xf0]  ;;  %v653_v49 = vld [vmem:[#allocation5 + $0xb0] sm:$0xf] }
  0x1b   :  { %282 = vmatpush.bf16.msra.mxu1 %v670_v33  ;;  %v666_v50 = vor.u32 %v781_v42, %v663_v43  ;;  %v780_v51 = vld [vmem:[#allocation5 + $0xb4] sm:$0xf0]  ;;  %v763_v52 = vld [vmem:[#allocation5 + $0x34] sm:$0xf]  ;;  %v591_v53 = vld [vmem:[#allocation5 + $0x38] sm:$0xf0]  ;;  %v590_v56 = vor.u32 %v764_v48, %v589_v47 }
  0x1c   :  { %296 = vmatpush.bf16.msra.mxu2 %v610_v34  ;;  %v779_v54 = vld [vmem:[#allocation5 + $0xb4] sm:$0xf]  ;;  %v655_v55 = vld [vmem:[#allocation5 + $0xb8] sm:$0xf0]  ;;  %v654_v57 = vor.u32 %v780_v51, %v653_v49  ;;  %v594_v58 = vor.u32 %v763_v52, %v591_v53  ;;  %v581_v59 = vld [vmem:[#allocation5 + $0x20] sm:$0xf] }
  0x1d   :  { %310 = vmatpush.bf16.msra.mxu3 %v674_v38  ;;  %v762_v60 = vld [vmem:[#allocation5 + $0x24] sm:$0xf0]  ;;  %v645_v61 = vld [vmem:[#allocation5 + $0xa0] sm:$0xf]  ;;  %v658_v62 = vor.u32 %v779_v54, %v655_v55  ;;  %v761_v0 = vld [vmem:[#allocation5 + $0x24] sm:$0xf] }
  0x1e   :  { %269 = vmatpush.bf16.msra.mxu0 %v598_v44  ;;  %v778_v63 = vld [vmem:[#allocation5 + $0xa4] sm:$0xf0]  ;;  %v583_v1 = vld [vmem:[#allocation5 + $0x28] sm:$0xf0]  ;;  %v777_v2 = vld [vmem:[#allocation5 + $0xa4] sm:$0xf]  ;;  %v582_v4 = vor.u32 %v762_v60, %v581_v59 }
  0x1f   :  { %283 = vmatpush.bf16.msra.mxu1 %v662_v45  ;;  %v647_v3 = vld [vmem:[#allocation5 + $0xa8] sm:$0xf0]  ;;  %v646_v5 = vor.u32 %v778_v63, %v645_v61  ;;  %v586_v6 = vor.u32 %v761_v0, %v583_v1  ;;  %v573_v7 = vld [vmem:[#allocation5 + $0x10] sm:$0xf]  ;;  %v760_v8 = vld [vmem:[#allocation5 + $0x14] sm:$0xf0] }
  0x20   :  { %297 = vmatpush.bf16.msra.mxu2 %v602_v46  ;;  %v637_v9 = vld [vmem:[#allocation5 + $0x90] sm:$0xf]  ;;  %v650_v10 = vor.u32 %v777_v2, %v647_v3  ;;  %v776_v11 = vld [vmem:[#allocation5 + $0x94] sm:$0xf0]  ;;  %v759_v12 = vld [vmem:[#allocation5 + $0x14] sm:$0xf]  ;;  %v574_v16 = vor.u32 %v760_v8, %v573_v7  ;;  %v484_v8 = vlaneseq }
  0x21   :  { %311 = vmatpush.bf16.msra.mxu3 %v666_v50  ;;  %v575_v13 = vld [vmem:[#allocation5 + $0x18] sm:$0xf0]  ;;  %v775_v14 = vld [vmem:[#allocation5 + $0x94] sm:$0xf]  ;;  %v638_v17 = vor.u32 %v776_v11, %v637_v9  ;;  %v565_v19 = vld [vmem:[#allocation5] sm:$0xf] }
  0x22   :  { %270 = vmatpush.bf16.msra.mxu0 %v590_v56  ;;  %v639_v15 = vld [vmem:[#allocation5 + $0x98] sm:$0xf0]  ;;  %v578_v18 = vor.u32 %v759_v12, %v575_v13  ;;  %v758_v20 = vld [vmem:[#allocation5 + $0x4] sm:$0xf0]  ;;  %v629_v21 = vld [vmem:[#allocation5 + $0x80] sm:$0xf] }
  0x23   :  { %284 = vmatpush.bf16.msra.mxu1 %v654_v57  ;;  %v642_v22 = vor.u32 %v775_v14, %v639_v15  ;;  %v774_v23 = vld [vmem:[#allocation5 + $0x84] sm:$0xf0]  ;;  %v757_v24 = vld [vmem:[#allocation5 + $0x4] sm:$0xf]  ;;  %v567_v25 = vld [vmem:[#allocation5 + $0x8] sm:$0xf0]  ;;  %v566_v28 = vor.u32 %v758_v20, %v565_v19 }
  0x24   :  { %298 = vmatpush.bf16.msra.mxu2 %v594_v58  ;;  %v773_v26 = vld [vmem:[#allocation5 + $0x84] sm:$0xf]  ;;  %v631_v27 = vld [vmem:[#allocation5 + $0x88] sm:$0xf0]  ;;  %v557_v29 = vld [vmem:[#allocation2] sm:$0xf]  ;;  %v630_v31 = vor.u32 %v774_v23, %v629_v21  ;;  %v570_v32 = vor.u32 %v757_v24, %v567_v25 }
  0x25   :  { %312 = vmatpush.bf16.msra.mxu3 %v658_v62  ;;  %v756_v30 = vld [vmem:[#allocation2 + $0x4] sm:$0xf0]  ;;  %v755_v33 = vld [vmem:[#allocation2 + $0x4] sm:$0xf]  ;;  %v559_v34 = vld [vmem:[#allocation2 + $0x8] sm:$0xf0]  ;;  %v634_v35 = vor.u32 %v773_v26, %v631_v27 }
  0x26   :  { %271 = vmatpush.bf16.msra.mxu0 %v582_v4  ;;  %v796_v36 = vld [vmem:[#allocation7 + $0x38] sm:$0xff]  ;;  %v558_v37 = vor.u32 %v756_v30, %v557_v29  ;;  %v562_v39 = vor.u32 %v755_v33, %v559_v34  ;;  %v795_v40 = vld [vmem:[#allocation7 + $0x30] sm:$0xff]  ;;  %v794_v42 = vld [vmem:[#allocation7 + $0x28] sm:$0xff]  ;;  %v485_v9 = vand.u32 127, %v484_v8  ;;  %s938_s2 = smov [#allocation8]   ;;  %s541_s5 = sshll.u32 %s983_s3, 4  ;;  %s542_s5 = int_to_ptr.hbm [resolvable:$true] %s541_s5 }
  0x27   :  { %285 = vmatpush.bf16.msra.mxu1 %v646_v5  ;;  %v804_v38 = vld [vmem:[#allocation7 + $0x78] sm:$0xff]  ;;  %v803_v41 = vld [vmem:[#allocation7 + $0x70] sm:$0xff]  ;;  %v793_v43 = vld [vmem:[#allocation7 + $0x20] sm:$0xff]  ;;  %s539_s29 = sshll.u32 %s938_s2, 4  ;;  %s540_s29 = int_to_ptr.vmem [resolvable:$true] %s539_s29 }
  0x28   :  { %299 = vmatpush.bf16.msra.mxu2 %v586_v6  ;;  %v802_v44 = vld [vmem:[#allocation7 + $0x68] sm:$0xff]  ;;  %v792_v45 = vld [vmem:[#allocation7 + $0x18] sm:$0xff]  ;;  %v801_v46 = vld [vmem:[#allocation7 + $0x60] sm:$0xff]  ;;  %vm486_vm0 = vcmp.lt.s32.totalorder %v485_v9, 9 }
  0x29   :  { %313 = vmatpush.bf16.msra.mxu3 %v650_v10  ;;  %v791_v47 = vld [vmem:[#allocation7 + $0x10] sm:$0xff]  ;;  %v800_v48 = vld [vmem:[#allocation7 + $0x58] sm:$0xff]  ;;  %v790_v49 = vld [vmem:[#allocation7 + $0x8] sm:$0xff] }
  0x2a   :  { %272 = vmatpush.bf16.msra.mxu0 %v574_v16  ;;  %v799_v50 = vld [vmem:[#allocation7 + $0x50] sm:$0xff]  ;;  %v789_v51 = vld [vmem:[#allocation7] sm:$0xff]  ;;  %v798_v52 = vld [vmem:[#allocation7 + $0x48] sm:$0xff] }
  0x2b   :  { %286 = vmatpush.bf16.msra.mxu1 %v638_v17  ;;  %v797_v53 = vld [vmem:[#allocation7 + $0x40] sm:$0xff] }
  0x2c   :  { %300 = vmatpush.bf16.msra.mxu2 %v578_v18 }
  0x2d   :  { %314 = vmatpush.bf16.msra.mxu3 %v642_v22 }
  0x2e   :  { %273 = vmatpush.bf16.msra.mxu0 %v566_v28 }
  0x2f   :  { %287 = vmatpush.bf16.msra.mxu1 %v630_v31 }
  0x30   :  { %301 = vmatpush.bf16.msra.mxu2 %v570_v32 }
  0x31   :  { %315 = vmatpush.bf16.msra.mxu3 %v634_v35  ;;  %274 = vmatmul.bf16.vlgmr.msra.gmra.mxu0 %v558_v37 }
  0x32   :  { %456 = vmatpush.bf16.msrb.mxu0 %v796_v36  ;;  %288 = vmatmul.bf16.vlgmr.msra.gmra.mxu1 %v562_v39 }
  0x33   :  { %470 = vmatpush.bf16.msrb.mxu1 %v804_v38  ;;  %302 = vmatmul.bf16.vlgmr.msra.gmra.mxu2 %v558_v37 }
  0x34   :  { %316 = vmatmul.bf16.vlgmr.msra.gmra.mxu3 %v562_v39 }
  0x36   :  { %457 = vmatpush.bf16.msrb.mxu0 %v795_v40 }
  0x37   :  { %471 = vmatpush.bf16.msrb.mxu1 %v803_v41 }
  0x3a   :  { %458 = vmatpush.bf16.msrb.mxu0 %v794_v42 }
  0x3b   :  { %472 = vmatpush.bf16.msrb.mxu1 %v802_v44 }
  0x3e   :  { %459 = vmatpush.bf16.msrb.mxu0 %v793_v43 }
  0x3f   :  { %473 = vmatpush.bf16.msrb.mxu1 %v801_v46 }
  0x42   :  { %460 = vmatpush.bf16.msrb.mxu0 %v792_v45 }
  0x43   :  { %474 = vmatpush.bf16.msrb.mxu1 %v800_v48 }
  0x46   :  { %461 = vmatpush.bf16.msrb.mxu0 %v791_v47 }
  0x47   :  { %475 = vmatpush.bf16.msrb.mxu1 %v799_v50 }
  0x4a   :  { %462 = vmatpush.bf16.msrb.mxu0 %v790_v49 }
  0x4b   :  { %476 = vmatpush.bf16.msrb.mxu1 %v798_v52 }
  0x4e   :  { %463 = vmatpush.bf16.msrb.mxu0 %v789_v51 }
  0x4f   :  { %477 = vmatpush.bf16.msrb.mxu1 %v797_v53 }
  0xae   :  { %v275_v54 = vpop.f32.mrf.mxu0 }
  0xaf   :  { %v289_v55 = vpop.f32.mrf.mxu1 }
  0xb0   :  { %v290_v56 = vadd.f32 %v289_v55, %v275_v54 }
  0xb2   :  { %813 = vtanh.f32 %v290_v56 }
  0xb6   :  { %v303_v57 = vpop.f32.mrf.mxu2  ;;  %v277_v59 = vpop.f32.mrf.mxu0 }
  0xb7   :  { %v317_v58 = vpop.f32.mrf.mxu3  ;;  %v291_v60 = vpop.f32.mrf.mxu1 }
  0xb8   :  { %v292_v61 = vadd.f32 %v291_v60, %v277_v59  ;;  %v318_v62 = vadd.f32 %v317_v58, %v303_v57  ;;  %v814_v1 = vpop.eup %813 }
  0xba   :  { %815 = vtanh.f32 %v292_v61 }
  0xbb   :  { %817 = vtanh.f32 %v318_v62 }
  0xbe   :  { %v305_v63 = vpop.f32.mrf.mxu2 }
  0xbf   :  { %v319_v0 = vpop.f32.mrf.mxu3 }
  0xc0   :  { %v320_v2 = vadd.f32 %v319_v0, %v305_v63  ;;  %v816_v3 = vpop.eup %815 }
  0xc1   :  { %v326_v4 = vpack.c.bf16 %v816_v3, %v814_v1  ;;  %v818_v5 = vpop.eup %817 }
  0xc2   :  { %819 = vtanh.f32 %v320_v2 }
  0xc3   :  { %464 = vmatmul.bf16.vlgmr.msrb.gmra.mxu0 %v326_v4 }
  0xc8   :  { %v820_v6 = vpop.eup %819 }
  0xc9   :  { %v327_v7 = vpack.c.bf16 %v820_v6, %v818_v5 }
  0xcb   :  { %478 = vmatmul.bf16.vlgmr.msrb.gmra.mxu1 %v327_v7 }
 0x140   :  { %v465_v10 = vpop.f32.mrf.mxu0 }
 0x148   :  { %v479_v11 = vpop.f32.mrf.mxu1  ;;  %v467_v14 = vpop.f32.mrf.mxu0 }
 0x149   :  { %v480_v12 = vadd.f32 %v479_v11, %v465_v10 }
 0x14b   :  { %v487_v13 = vsel %vm486_vm0, %v480_v12, -inf }
 0x14c   :  { %489 = vmax.xlane.f32.xlu0 %v487_v13 }
 0x150   :  { %v481_v15 = vpop.f32.mrf.mxu1 }
 0x151   :  { %v482_v16 = vadd.f32 %v481_v15, %v467_v14 }
 0x153   :  { %v488_v17 = vsel %vm486_vm0, %v482_v16, -inf }
 0x154   :  { %491 = vmax.xlane.f32.xlu0 %v488_v17 }
 0x1bf   :  { %v490_v18 = vpop.xlane.xlu0 %489 }
 0x1c0   :  { %v493_v19 = vsub.f32 %v487_v13, %v490_v18 }
 0x1c2   :  { %v495_v20 = vmul.f32 1.442695, %v493_v19 }
 0x1c4   :  { %821 = vpow2.f32 %v495_v20 }
 0x1c7   :  { %v492_v21 = vpop.xlane.xlu0 %491 }
 0x1c8   :  { %v494_v22 = vsub.f32 %v488_v17, %v492_v21 }
 0x1ca   :  { %v822_v23 = vpop.eup %821  ;;  %v497_v24 = vmul.f32 1.442695, %v494_v22 }
 0x1cb   :  { %499 = vadd.xlane.f32.xlu1 %v822_v23 }
 0x1cc   :  { %823 = vpow2.f32 %v497_v24 }
 0x1d2   :  { %v824_v25 = vpop.eup %823 }
 0x1d3   :  { %501 = vadd.xlane.f32.xlu1 %v824_v25 }
 0x23e   :  { %v500_v26 = vpop.xlane.xlu1 %499 }
 0x23f   :  { %825 = vrcp.f32 %v500_v26  ;;  %v514_v31 = vand.u32 2147483648, %v500_v26  ;;  %v512_v33 = vand.u32 2147483647, %v500_v26  ;;  %vm508_vm2 = vweird.f32 %v500_v26 }
 0x241   :  { %v515_v36 = vor.u32 1.1754944e-38, %v514_v31  ;;  %vm513_vm4 = vcmp.eq.f32.partialorder %v512_v33, 8.507059e+37 }
 0x245   :  { %v826_v27 = vpop.eup %825 }
 0x246   :  { %v504_v28 = vmul.f32 %v826_v27, %v500_v26  ;;  %v502_v29 = vpop.xlane.xlu1 %501  ;;  %vm509_vm1 = vweird.f32 %v826_v27 }
 0x247   :  { %827 = vrcp.f32 %v502_v29  ;;  %vm510_vm3 = vmor %vm508_vm2, %vm509_vm1  ;;  %v528_v42 = vand.u32 2147483648, %v502_v29  ;;  %v526_v44 = vand.u32 2147483647, %v502_v29  ;;  %vm522_vm6 = vweird.f32 %v502_v29 }
 0x248   :  { %v505_v30 = vsub.f32 1.0, %v504_v28 }
 0x249   :  { %v529_v46 = vor.u32 1.1754944e-38, %v528_v42  ;;  %vm527_vm8 = vcmp.eq.f32.partialorder %v526_v44, 8.507059e+37 }
 0x24a   :  { %v506_v32 = vmul.f32 %v826_v27, %v505_v30 }
 0x24c   :  { %v507_v34 = vadd.f32 %v826_v27, %v506_v32 }
 0x24d   :  { %v828_v35 = vpop.eup %827 }
 0x24e   :  { %v518_v37 = vmul.f32 %v828_v35, %v502_v29  ;;  %v511_v38 = vsel %vm510_vm3, %v826_v27, %v507_v34  ;;  %vm523_vm5 = vweird.f32 %v828_v35 }
 0x24f   :  { %v516_v39 = vsel %vm513_vm4, %v515_v36, %v511_v38  ;;  %vm524_vm7 = vmor %vm522_vm6, %vm523_vm5 }
 0x250   :  { %v519_v40 = vsub.f32 1.0, %v518_v37  ;;  %v531_v41 = vmul.f32 %v822_v23, %v516_v39 }
 0x252   :  { %v520_v43 = vmul.f32 %v828_v35, %v519_v40  ;;  %533 = vst [vmem:[#allocation8] sm:$0xff] %v531_v41 }
 0x254   :  { %v521_v45 = vadd.f32 %v828_v35, %v520_v43 }
 0x256   :  { %v525_v47 = vsel %vm524_vm7, %v828_v35, %v521_v45 }
 0x257   :  { %v530_v48 = vsel %vm527_vm8, %v529_v46, %v525_v47 }
 0x258   :  { %v532_v49 = vmul.f32 %v824_v25, %v530_v48 }
 0x25a   :  { %534 = vst [vmem:[#allocation8 + $0x8] sm:$0xff] %v532_v49 }
 0x25b   :  { %547 = dma.vmem_to_hbm [thread:$0]  %s540_s29, 256, %s542_s5, [#allocation4], %s932_s20, %s932_s20, %s933_s21  }
 0x25c   :  { %929 = dma.done.wait [#allocation4], 256  }
 0x25d   :  { %930 = vsyncadd [#allocation4], 4294967040 }
 0x25e   :  { %552 = vsyncpa [#allocation3], 1 }
 0x25f   :  { %553 = vsyncpa [#allocation6], 1 }
 0x260   :  { %554 = vsyncpa [#allocation4], 1 }

</bundles_post_ra>
